<compile_context>
chip_gen: v7x
topology: tpu7x:2x2x1
jax: 0.10.0
libtpu: 0.0.40
codegen_flags: <defaults>
</compile_context>

<pallas_src>
import functools
import math

import jax
import jax.numpy as jnp
from jax import lax
from jax.experimental import pallas as pl
from jax.experimental.pallas import tpu as pltpu


def _round_up(x, m):
    return ((x + m - 1) // m) * m


def _flash_kernel(q_ref, k_ref, v_ref,
                  wq_ref, bq_ref, wk_ref, bk_ref, wv_ref, bv_ref,
                  o_ref,
                  qproj_ref, m_ref, l_ref, acc_ref,
                  *, kv_tile, t_k, t_k_pad, scale, compute_dtype):
    ki = pl.program_id(1)

    @pl.when(ki == 0)
    def _init():
        # Project q once per query tile; fold the 1/sqrt(d_k) scale into the
        # small (tq, D) tile instead of the (tq, tk) logits tensor.
        qp = jnp.dot(q_ref[...], wq_ref[...], preferred_element_type=jnp.float32)
        qp = (qp + bq_ref[...]) * scale
        qproj_ref[...] = qp.astype(qproj_ref.dtype)
        m_ref[...] = jnp.full(m_ref.shape, -jnp.inf, m_ref.dtype)
        l_ref[...] = jnp.zeros(l_ref.shape, l_ref.dtype)
        acc_ref[...] = jnp.zeros(acc_ref.shape, acc_ref.dtype)

    # Project this K/V block (bf16 operands, f32 MXU accumulation).
    kp = (jnp.dot(k_ref[...], wk_ref[...], preferred_element_type=jnp.float32)
          + bk_ref[...]).astype(compute_dtype)
    vp = (jnp.dot(v_ref[...], wv_ref[...], preferred_element_type=jnp.float32)
          + bv_ref[...]).astype(compute_dtype)

    # logits = q' @ k'^T, expressed as dot_general contracting the last dims of
    # both operands so no explicit (XLU) transpose of the K tile is emitted.
    logits = lax.dot_general(qproj_ref[...], kp, (((1,), (1,)), ((), ())),
                             preferred_element_type=jnp.float32)

    # Mask out padded key rows (only emitted when padding exists; static check).
    if t_k_pad != t_k:
        key_idx = ki * kv_tile + lax.broadcasted_iota(jnp.int32, logits.shape, 1)
        logits = jnp.where(key_idx < t_k, logits, jnp.float32(-1e30))

    # Online softmax in f32.
    m_prev = m_ref[...]
    m_new = jnp.maximum(m_prev, jnp.max(logits, axis=-1, keepdims=True))
    alpha = jnp.exp(m_prev - m_new)
    p = jnp.exp(logits - m_new)
    l_ref[...] = alpha * l_ref[...] + jnp.sum(p, axis=-1, keepdims=True)
    acc_ref[...] = alpha * acc_ref[...] + jnp.dot(
        p.astype(compute_dtype), vp, preferred_element_type=jnp.float32)
    m_ref[...] = m_new

    @pl.when(ki == pl.num_programs(1) - 1)
    def _finalize():
        inv_l = pl.reciprocal(l_ref[...], approx=True)   # EUP slot, near-free
        o_ref[...] = (acc_ref[...] * inv_l).astype(o_ref.dtype)


def learnable_sdpa(q, k, v, params, *, q_tile_cap=256, kv_tile_cap=512,
                   compute_dtype=jnp.bfloat16):
    """q: (T_q, D), k/v: (T_k, D). params = (wq, bq, wk, bk, wv, bv) in PyTorch
    nn.Linear layout (W: (D_out, D_in), b: (D_out,)). Returns (T_q, D_out)."""
    wq, bq, wk, bk, wv, bv = params
    T_q, D_in = q.shape
    T_k = k.shape[0]
    D_out = wq.shape[0]
    d_k_proj = wk.shape[0]            # projected key dim -> softmax scale
    out_dtype = q.dtype

    # Lane-dense padding of the embedding dim; sublane-friendly row tiles.
    D_pad = _round_up(max(D_in, D_out), 128)
    q_tile = min(q_tile_cap, _round_up(T_q, 8))
    kv_tile = min(kv_tile_cap, _round_up(T_k, 128))
    T_q_pad = _round_up(T_q, q_tile)
    T_k_pad = _round_up(T_k, kv_tile)

    def pad2(x, rows, cols):
        return jnp.pad(x, ((0, rows - x.shape[0]), (0, cols - x.shape[1])))

    q_p = pad2(q, T_q_pad, D_pad).astype(compute_dtype)
    k_p = pad2(k, T_k_pad, D_pad).astype(compute_dtype)
    v_p = pad2(v, T_k_pad, D_pad).astype(compute_dtype)
    # Weights pre-transposed once to (D_in, D_out); biases lifted to (1, D_pad).
    wq_p = pad2(wq.T, D_pad, D_pad).astype(compute_dtype)
    wk_p = pad2(wk.T, D_pad, D_pad).astype(compute_dtype)
    wv_p = pad2(wv.T, D_pad, D_pad).astype(compute_dtype)
    bq_p = pad2(bq.reshape(1, -1), 1, D_pad).astype(jnp.float32)
    bk_p = pad2(bk.reshape(1, -1), 1, D_pad).astype(jnp.float32)
    bv_p = pad2(bv.reshape(1, -1), 1, D_pad).astype(jnp.float32)

    n_q = T_q_pad // q_tile
    n_kv = T_k_pad // kv_tile
    scale = 1.0 / math.sqrt(float(d_k_proj))

    kernel = functools.partial(
        _flash_kernel, kv_tile=kv_tile, t_k=T_k, t_k_pad=T_k_pad,
        scale=scale, compute_dtype=compute_dtype)

    const = lambda i, j: (0, 0)   # weights/biases: resident in VMEM, no re-DMA
    grid_spec = pltpu.PrefetchScalarGridSpec(
        num_scalar_prefetch=0,
        grid=(n_q, n_kv),
        in_specs=[
            pl.BlockSpec((q_tile, D_pad), lambda i, j: (i, 0)),   # q
            pl.BlockSpec((kv_tile, D_pad), lambda i, j: (j, 0)),  # k
            pl.BlockSpec((kv_tile, D_pad), lambda i, j: (j, 0)),  # v
            pl.BlockSpec((D_pad, D_pad), const),                  # wq^T
            pl.BlockSpec((1, D_pad), const),                      # bq
            pl.BlockSpec((D_pad, D_pad), const),                  # wk^T
            pl.BlockSpec((1, D_pad), const),                      # bk
            pl.BlockSpec((D_pad, D_pad), const),                  # wv^T
            pl.BlockSpec((1, D_pad), const),                      # bv
        ],
        out_specs=pl.BlockSpec((q_tile, D_pad), lambda i, j: (i, 0)),
        scratch_shapes=[
            pltpu.VMEM((q_tile, D_pad), compute_dtype),   # projected+scaled q
            pltpu.VMEM((q_tile, 1), jnp.float32),         # running max
            pltpu.VMEM((q_tile, 1), jnp.float32),         # running denom
            pltpu.VMEM((q_tile, D_pad), jnp.float32),     # output accumulator
        ],
    )

    out_pad = pl.pallas_call(
        kernel,
        out_shape=jax.ShapeDtypeStruct((T_q_pad, D_pad), out_dtype),
        grid_spec=grid_spec,
        compiler_params=pltpu.CompilerParams(
            dimension_semantics=("parallel", "arbitrary"),
            vmem_limit_bytes=32 * 1024 * 1024,   # safe on v5e/v6e/v7x alike
        ),
    )(q_p, k_p, v_p, wq_p, bq_p, wk_p, bk_p, wv_p, bv_p)

    return out_pad[:T_q, :D_out]


def _reference(q, k, v, params):
    wq, bq, wk, bk, wv, bv = params
    qp = q @ wq.T + bq
    kp = k @ wk.T + bk
    vp = v @ wv.T + bv
    logits = (qp @ kp.T) / jnp.sqrt(jnp.float32(kp.shape[-1]))
    attn = jax.nn.softmax(logits, axis=-1)
    return attn @ vp


if __name__ == "__main__":
    # Shapes straight from the PyTorch spec: q (5, 4), k/v (8, 4), embed_dim=4.
    E, T_q, T_k = 4, 5, 8

    key = jax.random.PRNGKey(0)
    kq, kk, kv, kwq, kbq, kwk, kbk, kwv, kbv = jax.random.split(key, 9)

    q = jax.random.normal(kq, (T_q, E), dtype=jnp.float32)
    k = jax.random.normal(kk, (T_k, E), dtype=jnp.float32)
    v = jax.random.normal(kv, (T_k, E), dtype=jnp.float32)

    # PyTorch nn.Linear-style init: W (D_out, D_in), b (D_out,), U(-1/sqrt(E), 1/sqrt(E)).
    s = 1.0 / math.sqrt(E)
    wq = jax.random.uniform(kwq, (E, E), jnp.float32, -s, s)
    bq = jax.random.uniform(kbq, (E,), jnp.float32, -s, s)
    wk = jax.random.uniform(kwk, (E, E), jnp.float32, -s, s)
    bk = jax.random.uniform(kbk, (E,), jnp.float32, -s, s)
    wv = jax.random.uniform(kwv, (E, E), jnp.float32, -s, s)
    bv = jax.random.uniform(kbv, (E,), jnp.float32, -s, s)
    params = (wq, bq, wk, bk, wv, bv)

    # Exercise both the exact-precision path and the fast bf16-operand path.
    out_f32 = learnable_sdpa(q, k, v, params, compute_dtype=jnp.float32)
    out_bf16 = learnable_sdpa(q, k, v, params, compute_dtype=jnp.bfloat16)
    jax.block_until_ready((out_f32, out_bf16))

    ref = _reference(q, k, v, params)
    assert out_f32.shape == (T_q, E)
    assert out_bf16.shape == (T_q, E)
    # f32 path: only differs by online-softmax reassociation + approx reciprocal.
    assert jnp.allclose(out_f32, ref, atol=1e-3, rtol=1e-3), "f32 mismatch vs. reference"
    # bf16 MXU-operand path: tolerance reflects bf16 operand rounding.
    assert jnp.allclose(out_bf16, ref, atol=1e-1, rtol=1e-1), "bf16 mismatch vs. reference"

    print("KERNEL_OK")
</pallas_src>

<mosaic_0001>
module attributes {stable_mosaic.version = 11 : i64} {
  func.func @_flash_kernel(%arg0: i32, %arg1: i32, %arg2: memref<8x128xf32, #tpu.memory_space<vmem>>, %arg3: memref<128x128xf32, #tpu.memory_space<vmem>>, %arg4: memref<128x128xf32, #tpu.memory_space<vmem>>, %arg5: memref<128x128xf32, #tpu.memory_space<vmem>>, %arg6: memref<1x128xf32, #tpu.memory_space<vmem>>, %arg7: memref<128x128xf32, #tpu.memory_space<vmem>>, %arg8: memref<1x128xf32, #tpu.memory_space<vmem>>, %arg9: memref<128x128xf32, #tpu.memory_space<vmem>>, %arg10: memref<1x128xf32, #tpu.memory_space<vmem>>, %arg11: memref<8x128xf32, #tpu.memory_space<vmem>>, %arg12: memref<8x128xf32, #tpu.memory_space<vmem>>, %arg13: memref<8x1xf32, #tpu.memory_space<vmem>>, %arg14: memref<8x1xf32, #tpu.memory_space<vmem>>, %arg15: memref<8x128xf32, #tpu.memory_space<vmem>>) attributes {dimension_semantics = [#tpu.dimension_semantics<parallel>, #tpu.dimension_semantics<arbitrary>], iteration_bounds = array<i64: 1, 1>, scalar_prefetch = 0 : i64, scratch_operands = 4 : i64, tpu.core_type = #tpu.core_type<tc>, window_params = [{transform_indices = @transform_0, window_bounds = array<i64: 8, 128>}, {transform_indices = @transform_1, window_bounds = array<i64: 128, 128>}, {transform_indices = @transform_2, window_bounds = array<i64: 128, 128>}, {pipeline_mode = #tpu.pipeline_mode<synchronous>, transform_indices = @transform_3, window_bounds = array<i64: 128, 128>}, {pipeline_mode = #tpu.pipeline_mode<synchronous>, transform_indices = @transform_4, window_bounds = array<i64: 1, 128>}, {pipeline_mode = #tpu.pipeline_mode<synchronous>, transform_indices = @transform_5, window_bounds = array<i64: 128, 128>}, {pipeline_mode = #tpu.pipeline_mode<synchronous>, transform_indices = @transform_6, window_bounds = array<i64: 1, 128>}, {pipeline_mode = #tpu.pipeline_mode<synchronous>, transform_indices = @transform_7, window_bounds = array<i64: 128, 128>}, {pipeline_mode = #tpu.pipeline_mode<synchronous>, transform_indices = @transform_8, window_bounds = array<i64: 1, 128>}, {transform_indices = @transform_9, window_bounds = array<i64: 8, 128>}]} {
    %c0_i32 = arith.constant 0 : i32
    %0 = arith.cmpi eq, %arg1, %c0_i32 : i32
    %1 = arith.extui %0 : i1 to i32
    %c0_i32_0 = arith.constant 0 : i32
    %2 = arith.cmpi ne, %1, %c0_i32_0 : i32
    scf.if %2 {
      %c0_34 = arith.constant 0 : index
      %c0_35 = arith.constant 0 : index
      %50 = vector.load %arg2[%c0_34, %c0_35] : memref<8x128xf32, #tpu.memory_space<vmem>>, vector<8x128xf32>
      %c0_36 = arith.constant 0 : index
      %c0_37 = arith.constant 0 : index
      %51 = vector.load %arg5[%c0_36, %c0_37] : memref<128x128xf32, #tpu.memory_space<vmem>>, vector<128x128xf32>
      %cst_38 = arith.constant dense<0.000000e+00> : vector<8x128xf32>
      %52 = tpu.matmul %50, %51, %cst_38 {dimension_numbers = #tpu.dot_dimension_numbers<[1], [0], [0], [1], [0, 0, 1, 1], [], []>} : vector<8x128xf32>, vector<128x128xf32>, vector<8x128xf32> -> vector<8x128xf32>
      %c0_39 = arith.constant 0 : index
      %c0_40 = arith.constant 0 : index
      %53 = vector.load %arg6[%c0_39, %c0_40] : memref<1x128xf32, #tpu.memory_space<vmem>>, vector<1x128xf32>
      %54 = vector.broadcast %53 : vector<1x128xf32> to vector<8x128xf32>
      %55 = arith.addf %52, %54 : vector<8x128xf32>
      %cst_41 = arith.constant 5.000000e-01 : f32
      %56 = vector.broadcast %cst_41 : f32 to vector<8x128xf32>
      %57 = arith.mulf %55, %56 : vector<8x128xf32>
      %c0_42 = arith.constant 0 : index
      %c0_43 = arith.constant 0 : index
      %58 = vector.load %arg12[%c0_42, %c0_43] : memref<8x128xf32, #tpu.memory_space<vmem>>, vector<8x128xf32>
      tpu.vector_store %arg12[%c0_42, %c0_43], %57 {strides = array<i32>} : memref<8x128xf32, #tpu.memory_space<vmem>>, vector<8x128xf32>,
      %cst_44 = arith.constant 0xFF800000 : f32
      %59 = vector.broadcast %cst_44 : f32 to vector<8x1xf32>
      %c0_45 = arith.constant 0 : index
      %c0_46 = arith.constant 0 : index
      %60 = vector.load %arg13[%c0_45, %c0_46] : memref<8x1xf32, #tpu.memory_space<vmem>>, vector<8x1xf32>
      tpu.vector_store %arg13[%c0_45, %c0_46], %59 {strides = array<i32>} : memref<8x1xf32, #tpu.memory_space<vmem>>, vector<8x1xf32>,
      %cst_47 = arith.constant 0.000000e+00 : f32
      %61 = vector.broadcast %cst_47 : f32 to vector<8x1xf32>
      %c0_48 = arith.constant 0 : index
      %c0_49 = arith.constant 0 : index
      %62 = vector.load %arg14[%c0_48, %c0_49] : memref<8x1xf32, #tpu.memory_space<vmem>>, vector<8x1xf32>
      tpu.vector_store %arg14[%c0_48, %c0_49], %61 {strides = array<i32>} : memref<8x1xf32, #tpu.memory_space<vmem>>, vector<8x1xf32>,
      %cst_50 = arith.constant 0.000000e+00 : f32
      %63 = vector.broadcast %cst_50 : f32 to vector<8x128xf32>
      %c0_51 = arith.constant 0 : index
      %c0_52 = arith.constant 0 : index
      %64 = vector.load %arg15[%c0_51, %c0_52] : memref<8x128xf32, #tpu.memory_space<vmem>>, vector<8x128xf32>
      tpu.vector_store %arg15[%c0_51, %c0_52], %63 {strides = array<i32>} : memref<8x128xf32, #tpu.memory_space<vmem>>, vector<8x128xf32>,
    } else {
    }
    %c0 = arith.constant 0 : index
    %c0_1 = arith.constant 0 : index
    %3 = vector.load %arg3[%c0, %c0_1] : memref<128x128xf32, #tpu.memory_space<vmem>>, vector<128x128xf32>
    %c0_2 = arith.constant 0 : index
    %c0_3 = arith.constant 0 : index
    %4 = vector.load %arg7[%c0_2, %c0_3] : memref<128x128xf32, #tpu.memory_space<vmem>>, vector<128x128xf32>
    %cst = arith.constant dense<0.000000e+00> : vector<128x128xf32>
    %5 = tpu.matmul %3, %4, %cst {dimension_numbers = #tpu.dot_dimension_numbers<[1], [0], [0], [1], [0, 0, 1, 1], [], []>} : vector<128x128xf32>, vector<128x128xf32>, vector<128x128xf32> -> vector<128x128xf32>
    %c0_4 = arith.constant 0 : index
    %c0_5 = arith.constant 0 : index
    %6 = vector.load %arg8[%c0_4, %c0_5] : memref<1x128xf32, #tpu.memory_space<vmem>>, vector<1x128xf32>
    %7 = vector.broadcast %6 : vector<1x128xf32> to vector<128x128xf32>
    %8 = arith.addf %5, %7 : vector<128x128xf32>
    %c0_6 = arith.constant 0 : index
    %c0_7 = arith.constant 0 : index
    %9 = vector.load %arg4[%c0_6, %c0_7] : memref<128x128xf32, #tpu.memory_space<vmem>>, vector<128x128xf32>
    %c0_8 = arith.constant 0 : index
    %c0_9 = arith.constant 0 : index
    %10 = vector.load %arg9[%c0_8, %c0_9] : memref<128x128xf32, #tpu.memory_space<vmem>>, vector<128x128xf32>
    %cst_10 = arith.constant dense<0.000000e+00> : vector<128x128xf32>
    %11 = tpu.matmul %9, %10, %cst_10 {dimension_numbers = #tpu.dot_dimension_numbers<[1], [0], [0], [1], [0, 0, 1, 1], [], []>} : vector<128x128xf32>, vector<128x128xf32>, vector<128x128xf32> -> vector<128x128xf32>
    %c0_11 = arith.constant 0 : index
    %c0_12 = arith.constant 0 : index
    %12 = vector.load %arg10[%c0_11, %c0_12] : memref<1x128xf32, #tpu.memory_space<vmem>>, vector<1x128xf32>
    %13 = vector.broadcast %12 : vector<1x128xf32> to vector<128x128xf32>
    %14 = arith.addf %11, %13 : vector<128x128xf32>
    %c0_13 = arith.constant 0 : index
    %c0_14 = arith.constant 0 : index
    %15 = vector.load %arg12[%c0_13, %c0_14] : memref<8x128xf32, #tpu.memory_space<vmem>>, vector<8x128xf32>
    %cst_15 = arith.constant dense<0.000000e+00> : vector<8x128xf32>
    %16 = tpu.matmul %15, %8, %cst_15 {dimension_numbers = #tpu.dot_dimension_numbers<[1], [1], [0], [0], [0, 0, 1, 0], [], []>} : vector<8x128xf32>, vector<128x128xf32>, vector<8x128xf32> -> vector<8x128xf32>
    %c128_i32 = arith.constant 128 : i32
    %17 = arith.muli %arg1, %c128_i32 : i32
    %18 = tpu.iota {dimensions = array<i32: 1>} : vector<8x128xi32>
    %19 = vector.broadcast %17 : i32 to vector<8x128xi32>
    %20 = arith.addi %19, %18 : vector<8x128xi32>
    %c8_i32 = arith.constant 8 : i32
    %21 = vector.broadcast %c8_i32 : i32 to vector<8x128xi32>
    %22 = arith.cmpi slt, %20, %21 : vector<8x128xi32>
    %cst_16 = arith.constant -1.000000e+30 : f32
    %23 = vector.broadcast %cst_16 : f32 to vector<8x128xf32>
    %24 = arith.select %22, %16, %23 : vector<8x128xi1>, vector<8x128xf32>
    %c0_17 = arith.constant 0 : index
    %c0_18 = arith.constant 0 : index
    %25 = vector.load %arg13[%c0_17, %c0_18] : memref<8x1xf32, #tpu.memory_space<vmem>>, vector<8x1xf32>
    %cst_19 = arith.constant dense<0xFF800000> : vector<8xf32>
    %26 = vector.multi_reduction <maximumf>, %24, %cst_19 [1] : vector<8x128xf32> to vector<8xf32>
    %27 = vector.shape_cast %26 : vector<8xf32> to vector<8x1xf32>
    %28 = arith.maximumf %25, %27 : vector<8x1xf32>
    %29 = arith.subf %25, %28 : vector<8x1xf32>
    %30 = math.exp %29 : vector<8x1xf32>
    %31 = vector.broadcast %28 : vector<8x1xf32> to vector<8x128xf32>
    %32 = arith.subf %24, %31 : vector<8x128xf32>
    %33 = math.exp %32 : vector<8x128xf32>
    %c0_20 = arith.constant 0 : index
    %c0_21 = arith.constant 0 : index
    %34 = vector.load %arg14[%c0_20, %c0_21] : memref<8x1xf32, #tpu.memory_space<vmem>>, vector<8x1xf32>
    %35 = arith.mulf %30, %34 : vector<8x1xf32>
    %cst_22 = arith.constant dense<0.000000e+00> : vector<8xf32>
    %36 = vector.multi_reduction <add>, %33, %cst_22 [1] : vector<8x128xf32> to vector<8xf32>
    %37 = vector.shape_cast %36 : vector<8xf32> to vector<8x1xf32>
    %38 = arith.addf %35, %37 : vector<8x1xf32>
    %c0_23 = arith.constant 0 : index
    %c0_24 = arith.constant 0 : index
    %39 = vector.load %arg14[%c0_23, %c0_24] : memref<8x1xf32, #tpu.memory_space<vmem>>, vector<8x1xf32>
    tpu.vector_store %arg14[%c0_23, %c0_24], %38 {strides = array<i32>} : memref<8x1xf32, #tpu.memory_space<vmem>>, vector<8x1xf32>,
    %c0_25 = arith.constant 0 : index
    %c0_26 = arith.constant 0 : index
    %40 = vector.load %arg15[%c0_25, %c0_26] : memref<8x128xf32, #tpu.memory_space<vmem>>, vector<8x128xf32>
    %41 = vector.broadcast %30 : vector<8x1xf32> to vector<8x128xf32>
    %42 = arith.mulf %41, %40 : vector<8x128xf32>
    %cst_27 = arith.constant dense<0.000000e+00> : vector<8x128xf32>
    %43 = tpu.matmul %33, %14, %cst_27 {dimension_numbers = #tpu.dot_dimension_numbers<[1], [0], [0], [1], [0, 0, 1, 1], [], []>} : vector<8x128xf32>, vector<128x128xf32>, vector<8x128xf32> -> vector<8x128xf32>
    %44 = arith.addf %42, %43 : vector<8x128xf32>
    %c0_28 = arith.constant 0 : index
    %c0_29 = arith.constant 0 : index
    %45 = vector.load %arg15[%c0_28, %c0_29] : memref<8x128xf32, #tpu.memory_space<vmem>>, vector<8x128xf32>
    tpu.vector_store %arg15[%c0_28, %c0_29], %44 {strides = array<i32>} : memref<8x128xf32, #tpu.memory_space<vmem>>, vector<8x128xf32>,
    %c0_30 = arith.constant 0 : index
    %c0_31 = arith.constant 0 : index
    %46 = vector.load %arg13[%c0_30, %c0_31] : memref<8x1xf32, #tpu.memory_space<vmem>>, vector<8x1xf32>
    tpu.vector_store %arg13[%c0_30, %c0_31], %28 {strides = array<i32>} : memref<8x1xf32, #tpu.memory_space<vmem>>, vector<8x1xf32>,
    %c0_i32_32 = arith.constant 0 : i32
    %47 = arith.cmpi eq, %arg1, %c0_i32_32 : i32
    %48 = arith.extui %47 : i1 to i32
    %c0_i32_33 = arith.constant 0 : i32
    %49 = arith.cmpi ne, %48, %c0_i32_33 : i32
    scf.if %49 {
      %c0_34 = arith.constant 0 : index
      %c0_35 = arith.constant 0 : index
      %50 = vector.load %arg14[%c0_34, %c0_35] : memref<8x1xf32, #tpu.memory_space<vmem>>, vector<8x1xf32>
      %51 = tpu.reciprocal %50 {approx = true} : vector<8x1xf32> -> vector<8x1xf32>
      %c0_36 = arith.constant 0 : index
      %c0_37 = arith.constant 0 : index
      %52 = vector.load %arg15[%c0_36, %c0_37] : memref<8x128xf32, #tpu.memory_space<vmem>>, vector<8x128xf32>
      %53 = vector.broadcast %51 : vector<8x1xf32> to vector<8x128xf32>
      %54 = arith.mulf %52, %53 : vector<8x128xf32>
      %c0_38 = arith.constant 0 : index
      %c0_39 = arith.constant 0 : index
      %55 = vector.load %arg11[%c0_38, %c0_39] : memref<8x128xf32, #tpu.memory_space<vmem>>, vector<8x128xf32>
      tpu.vector_store %arg11[%c0_38, %c0_39], %54 {strides = array<i32>} : memref<8x128xf32, #tpu.memory_space<vmem>>, vector<8x128xf32>,
    } else {
    }
    return
  }
  func.func @transform_0(%arg0: i32, %arg1: i32) -> (i32, i32) {
    %c0_i32 = arith.constant 0 : i32
    %c0_i32_0 = arith.constant 0 : i32
    return %arg0, %c0_i32 : i32, i32
  }
  func.func @transform_1(%arg0: i32, %arg1: i32) -> (i32, i32) {
    %c0_i32 = arith.constant 0 : i32
    %c0_i32_0 = arith.constant 0 : i32
    return %arg1, %c0_i32 : i32, i32
  }
  func.func @transform_2(%arg0: i32, %arg1: i32) -> (i32, i32) {
    %c0_i32 = arith.constant 0 : i32
    %c0_i32_0 = arith.constant 0 : i32
    return %arg1, %c0_i32 : i32, i32
  }
  func.func @transform_3(%arg0: i32, %arg1: i32) -> (i32, i32) {
    %c0_i32 = arith.constant 0 : i32
    %c0_i32_0 = arith.constant 0 : i32
    %c0_i32_1 = arith.constant 0 : i32
    return %c0_i32, %c0_i32_0 : i32, i32
  }
  func.func @transform_4(%arg0: i32, %arg1: i32) -> (i32, i32) {
    %c0_i32 = arith.constant 0 : i32
    %c0_i32_0 = arith.constant 0 : i32
    %c0_i32_1 = arith.constant 0 : i32
    return %c0_i32, %c0_i32_0 : i32, i32
  }
  func.func @transform_5(%arg0: i32, %arg1: i32) -> (i32, i32) {
    %c0_i32 = arith.constant 0 : i32
    %c0_i32_0 = arith.constant 0 : i32
    %c0_i32_1 = arith.constant 0 : i32
    return %c0_i32, %c0_i32_0 : i32, i32
  }
  func.func @transform_6(%arg0: i32, %arg1: i32) -> (i32, i32) {
    %c0_i32 = arith.constant 0 : i32
    %c0_i32_0 = arith.constant 0 : i32
    %c0_i32_1 = arith.constant 0 : i32
    return %c0_i32, %c0_i32_0 : i32, i32
  }
  func.func @transform_7(%arg0: i32, %arg1: i32) -> (i32, i32) {
    %c0_i32 = arith.constant 0 : i32
    %c0_i32_0 = arith.constant 0 : i32
    %c0_i32_1 = arith.constant 0 : i32
    return %c0_i32, %c0_i32_0 : i32, i32
  }
  func.func @transform_8(%arg0: i32, %arg1: i32) -> (i32, i32) {
    %c0_i32 = arith.constant 0 : i32
    %c0_i32_0 = arith.constant 0 : i32
    %c0_i32_1 = arith.constant 0 : i32
    return %c0_i32, %c0_i32_0 : i32, i32
  }
  func.func @transform_9(%arg0: i32, %arg1: i32) -> (i32, i32) {
    %c0_i32 = arith.constant 0 : i32
    %c0_i32_0 = arith.constant 0 : i32
    return %arg0, %c0_i32 : i32, i32
  }
}

</mosaic_0001>

<bundles_post_ra>
// kernel: tpu_custom_call.1
= control target key start
LH: loop header
LB: loop body
LE: loop exit
PB: predicated region body
PF: predicated region fallthrough
CT: control target
= control target key end

     0   :  { %14 = vsyncpa [#allocation7], 0  ;;  %s1664_s0 = inlined_call_operand.hbm [shape: f32[8,128], index: 0, kind: input, shape index: {}]   ;;  %s1665_s1 = inlined_call_operand.hbm [shape: f32[128,128], index: 1, kind: input, shape index: {}]   ;;  %s1666_s2 = inlined_call_operand.hbm [shape: f32[128,128], index: 2, kind: input, shape index: {}]   ;;  %s1667_s3 = inlined_call_operand.hbm [shape: f32[128,128], index: 3, kind: input, shape index: {}]   ;;  %s1668_s4 = inlined_call_operand.vmem [shape: f32[1,128], index: 4, kind: input, shape index: {}]   ;;  %s1669_s5 = inlined_call_operand.hbm [shape: f32[128,128], index: 5, kind: input, shape index: {}]   ;;  %s1670_s6 = inlined_call_operand.vmem [shape: f32[1,128], index: 6, kind: input, shape index: {}]   ;;  %s1671_s7 = inlined_call_operand.hbm [shape: f32[128,128], index: 7, kind: input, shape index: {}]   ;;  %s1672_s8 = inlined_call_operand.vmem [shape: f32[1,128], index: 8, kind: input, shape index: {}]   ;;  %s1673_s9 = inlined_call_operand.hbm [shape: f32[8,128], index: 9, kind: output, shape index: {}]  }
   0x1   :  { %15 = vsyncpa [#allocation10], 0 }
   0x2   :  { %16 = vsyncpa [#allocation13], 0 }
   0x3   :  { %17 = vsyncpa [#allocation16], 0 }
   0x4   :  { %18 = vsyncpa [#allocation8], 0  ;;  %s1453_s30 = smov [#allocation9]   ;;  %s1289_s13 = scalar_lea.hbm %s1665_s1, 2048 }
   0x5   :  { %s34_s10 = sshll.u32 %s1453_s30, 4  ;;  %p1290_p0 = scmp.ne.s32.totalorder %s1665_s1, %s1289_s13  ;;  %s35_s10 = int_to_ptr.vmem [resolvable:$true] %s34_s10 }
   0x6   :  { %p1293_p1 = scmp.lt.u32.totalorder %s1289_s13, %s1665_s1 }
   0x8   :  { %p1295_p2 = pnand %p1293_p1, %p1290_p0 }
   0xa   :  { %1298 = shalt.err (!%p1295_p2)
}
   0xb   :  { %s1299_s18 = scalar_lea.vmem %s35_s10, 2048  ;;  %p1304_p4 = scmp.lt.s32.totalorder %s35_s10, %s35_s10 }
   0xc   :  { %p1300_p3 = scmp.ne.s32.totalorder %s35_s10, %s1299_s18  ;;  %p1305_p5 = scmp.lt.s32.totalorder %s1299_s18, %s1299_s18 }
   0xe   :  { %p1306_p6 = por %p1305_p5, %p1304_p4 }
  0x10   :  { %p1307_p7 = pnand %p1306_p6, %p1300_p3 }
  0x12   :  { %1310 = shalt.err (!%p1307_p7)
}
  0x13   :  { %s1454_s19 = smov 128   ;;  %s1455_s20 = smov 8  }
  0x14   :  { %40 = dma.hbm_to_vmem [thread:$0]  %s1665_s1, 2048, %s35_s10, [#allocation10], %s1454_s19, %s1454_s19, %s1455_s20  }
  0x15   :  { %s1456_s23 = smov [#allocation12]   ;;  %s1457_s25 = smov [#allocation6]  }
  0x16   :  { %s58_s24 = sshll.u32 %s1456_s23, 4  ;;  %s25_s26 = sshll.u32 %s1457_s25, 4  ;;  %s59_s24 = int_to_ptr.vmem [resolvable:$true] %s58_s24  ;;  %s26_s26 = int_to_ptr.vmem [resolvable:$true] %s25_s26 }
  0x17   :  { %s1311_s29 = scalar_lea.hbm %s1667_s3, 2048 }
  0x18   :  { %p1312_p8 = scmp.ne.s32.totalorder %s1667_s3, %s1311_s29  ;;  %p1315_p9 = scmp.lt.u32.totalorder %s1311_s29, %s1667_s3 }
  0x1a   :  { %p1317_p10 = pnand %p1315_p9, %p1312_p8 }
  0x1c   :  { %1320 = shalt.err (!%p1317_p10)
}
  0x1d   :  { %s1321_s1 = scalar_lea.vmem %s59_s24, 2048  ;;  %p1326_p12 = scmp.lt.s32.totalorder %s59_s24, %s59_s24 }
  0x1e   :  { %p1322_p11 = scmp.ne.s32.totalorder %s59_s24, %s1321_s1  ;;  %p1327_p13 = scmp.lt.s32.totalorder %s1321_s1, %s1321_s1 }
  0x20   :  { %p1328_p0 = por %p1327_p13, %p1326_p12 }
  0x22   :  { %p1329_p1 = pnand %p1328_p0, %p1322_p11 }
  0x24   :  { %1332 = shalt.err (!%p1329_p1)
}
  0x25   :  { %64 = dma.hbm_to_vmem [thread:$0]  %s1667_s3, 2048, %s59_s24, [#allocation13], %s1454_s19, %s1454_s19, %s1455_s20  }
  0x26   :  { %s1333_s17 = scalar_lea.hbm %s1664_s0, 128 }
  0x27   :  { %p1334_p2 = scmp.ne.s32.totalorder %s1664_s0, %s1333_s17  ;;  %p1337_p3 = scmp.lt.u32.totalorder %s1333_s17, %s1664_s0 }
  0x29   :  { %p1339_p4 = pnand %p1337_p3, %p1334_p2 }
  0x2b   :  { %1342 = shalt.err (!%p1339_p4)
}
  0x2c   :  { %s1343_s25 = scalar_lea.vmem %s26_s26, 128  ;;  %p1348_p6 = scmp.lt.s32.totalorder %s26_s26, %s26_s26 }
  0x2d   :  { %p1344_p5 = scmp.ne.s32.totalorder %s26_s26, %s1343_s25  ;;  %p1349_p7 = scmp.lt.s32.totalorder %s1343_s25, %s1343_s25 }
  0x2f   :  { %p1350_p8 = por %p1349_p7, %p1348_p6 }
  0x31   :  { %p1351_p9 = pnand %p1350_p8, %p1344_p5 }
  0x33   :  { %1354 = shalt.err (!%p1351_p9)
}
  0x34   :  { %28 = dma.hbm_to_vmem [thread:$0]  %s1664_s0, 128, %s26_s26, [#allocation7]  }
  0x35   :  { %s1458_s27 = smov [#allocation11]   ;;  %s1459_s29 = smov [#allocation14]  }
  0x36   :  { %s46_s28 = sshll.u32 %s1458_s27, 4  ;;  %s72_s30 = sshll.u32 %s1459_s29, 4  ;;  %s47_s28 = int_to_ptr.vmem [resolvable:$true] %s46_s28  ;;  %s73_s30 = int_to_ptr.vmem [resolvable:$true] %s72_s30 }
  0x37   :  { %s1355_s13 = scalar_lea.hbm %s1666_s2, 2048 }
  0x38   :  { %p1356_p10 = scmp.ne.s32.totalorder %s1666_s2, %s1355_s13  ;;  %p1359_p11 = scmp.lt.u32.totalorder %s1355_s13, %s1666_s2 }
  0x3a   :  { %p1361_p12 = pnand %p1359_p11, %p1356_p10 }
  0x3c   :  { %1364 = shalt.err (!%p1361_p12)
}
  0x3d   :  { %s1365_s0 = scalar_lea.vmem %s47_s28, 2048  ;;  %p1370_p0 = scmp.lt.s32.totalorder %s47_s28, %s47_s28 }
  0x3e   :  { %p1366_p13 = scmp.ne.s32.totalorder %s47_s28, %s1365_s0  ;;  %p1371_p1 = scmp.lt.s32.totalorder %s1365_s0, %s1365_s0 }
  0x40   :  { %p1372_p2 = por %p1371_p1, %p1370_p0 }
  0x42   :  { %p1373_p3 = pnand %p1372_p2, %p1366_p13 }
  0x44   :  { %1376 = shalt.err (!%p1373_p3)
}
  0x45   :  { %52 = dma.hbm_to_vmem [thread:$0]  %s1666_s2, 2048, %s47_s28, [#allocation10], %s1454_s19, %s1454_s19, %s1455_s20  }
  0x46   :  { %s1377_s21 = scalar_lea.hbm %s1669_s5, 2048 }
  0x47   :  { %p1378_p4 = scmp.ne.s32.totalorder %s1669_s5, %s1377_s21  ;;  %p1381_p5 = scmp.lt.u32.totalorder %s1377_s21, %s1669_s5 }
  0x49   :  { %p1383_p6 = pnand %p1381_p5, %p1378_p4 }
  0x4b   :  { %1386 = shalt.err (!%p1383_p6)
}
  0x4c   :  { %s1387_s24 = scalar_lea.vmem %s73_s30, 2048  ;;  %p1392_p8 = scmp.lt.s32.totalorder %s73_s30, %s73_s30 }
  0x4d   :  { %p1388_p7 = scmp.ne.s32.totalorder %s73_s30, %s1387_s24  ;;  %p1393_p9 = scmp.lt.s32.totalorder %s1387_s24, %s1387_s24 }
  0x4f   :  { %p1394_p10 = por %p1393_p9, %p1392_p8 }
  0x51   :  { %p1395_p11 = pnand %p1394_p10, %p1388_p7 }
  0x53   :  { %1398 = shalt.err (!%p1395_p11)
}
  0x54   :  { %78 = dma.hbm_to_vmem [thread:$0]  %s1669_s5, 2048, %s73_s30, [#allocation13], %s1454_s19, %s1454_s19, %s1455_s20  }
  0x55   :  { %s1460_s28 = smov [#allocation15]   ;;  %s1399_s13 = scalar_lea.hbm %s1671_s7, 2048 }
  0x56   :  { %s86_s29 = sshll.u32 %s1460_s28, 4  ;;  %p1400_p12 = scmp.ne.s32.totalorder %s1671_s7, %s1399_s13  ;;  %s87_s29 = int_to_ptr.vmem [resolvable:$true] %s86_s29 }
  0x57   :  { %p1403_p13 = scmp.lt.u32.totalorder %s1399_s13, %s1671_s7 }
  0x59   :  { %p1405_p0 = pnand %p1403_p13, %p1400_p12 }
  0x5b   :  { %1408 = shalt.err (!%p1405_p0)
}
  0x5c   :  { %s1409_s0 = scalar_lea.vmem %s87_s29, 2048  ;;  %p1414_p2 = scmp.lt.s32.totalorder %s87_s29, %s87_s29 }
  0x5d   :  { %p1410_p1 = scmp.ne.s32.totalorder %s87_s29, %s1409_s0  ;;  %p1415_p3 = scmp.lt.s32.totalorder %s1409_s0, %s1409_s0 }
  0x5f   :  { %p1416_p4 = por %p1415_p3, %p1414_p2 }
  0x61   :  { %p1417_p5 = pnand %p1416_p4, %p1410_p1 }
  0x63   :  { %1420 = shalt.err (!%p1417_p5)
}
  0x64   :  { %92 = dma.hbm_to_vmem [thread:$0]  %s1671_s7, 2048, %s87_s29, [#allocation16], %s1454_s19, %s1454_s19, %s1455_s20  }
  0x65   :  { %1443 = dma.done.wait [#allocation7], 128  }
  0x66   :  { %1444 = vsyncadd [#allocation7], 4294967168 }
  0x67   :  { %1445 = dma.done.wait [#allocation10], 4096  }
  0x68   :  { %1446 = vsyncadd [#allocation10], 4294963200 }
  0x69   :  { %1447 = dma.done.wait [#allocation13], 4096  }
  0x6a   :  { %1448 = vsyncadd [#allocation13], 4294963200 }
  0x6b   :  { %1449 = dma.done.wait [#allocation16], 2048  }
  0x6c   :  { %1450 = vsyncadd [#allocation16], 4294965248  ;;  %vm213_vm0 = vcmask 7168   ;;  %v1461_v0 = vmov 0.0|0.0   ;;  %vm1462_vm1 = vmmov 0   ;;  %v1463_v1 = vmov 0.0  }
  0x6d   :  { %1131 = vmatprep.subr.bf16.mxu0 %v1461_v0  ;;  %946 = vmatprep.mubr.msk.f32.mxu0 %vm1462_vm1, %v1463_v1  ;;  %215 = vst.msk [vmem:[#allocation4] sm:$0xff] %vm213_vm0, %v1463_v1  ;;  %v233_v2 = vld [vmem:[#allocation14] sm:$0xff]  ;;  %v234_v3 = vld [vmem:[#allocation14 + $0x8] sm:$0xff]  ;;  %v235_v4 = vld [vmem:[#allocation14 + $0x10] sm:$0xff] }
  0x6e   :  { %v1155_v5 = vpack.c.bf16 %v234_v3, %v233_v2  ;;  %v236_v6 = vld [vmem:[#allocation14 + $0x18] sm:$0xff]  ;;  %v237_v8 = vld [vmem:[#allocation14 + $0x20] sm:$0xff]  ;;  %v238_v9 = vld [vmem:[#allocation14 + $0x28] sm:$0xff] }
  0x6f   :  { %v1159_v7 = vpack.c.bf16 %v236_v6, %v235_v4  ;;  %v1163_v10 = vpack.c.bf16 %v238_v9, %v237_v8  ;;  %v217_v11 = vld [vmem:[#allocation9] sm:$0xff]  ;;  %v239_v12 = vld [vmem:[#allocation14 + $0x30] sm:$0xff]  ;;  %v240_v13 = vld [vmem:[#allocation14 + $0x38] sm:$0xff] }
  0x70   :  { %1156 = vmatprep.subr.bf16.mxu1 %v1155_v5  ;;  %981 = vmatprep.mubr.f32.mxu1 %v217_v11  ;;  %v118_v14 = vld [vmem:[#allocation12] sm:$0xff]  ;;  %v1167_v15 = vpack.c.bf16 %v240_v13, %v239_v12  ;;  %v119_v16 = vld [vmem:[#allocation12 + $0x8] sm:$0xff]  ;;  %v120_v17 = vld [vmem:[#allocation12 + $0x10] sm:$0xff] }
  0x71   :  { %1158 = vmatpush3.bf16.msra.mxu1 %v1155_v5  ;;  %v121_v18 = vld [vmem:[#allocation12 + $0x18] sm:$0xff]  ;;  %v241_v19 = vld [vmem:[#allocation14 + $0x40] sm:$0xff]  ;;  %v242_v20 = vld [vmem:[#allocation14 + $0x48] sm:$0xff]  ;;  %v1132_v21 = vpack.c.bf16 %v119_v16, %v118_v14 }
  0x72   :  { %1160 = vmatprep.subr.bf16.mxu1 %v1159_v7  ;;  %v1135_v22 = vpack.c.bf16 %v121_v18, %v120_v17  ;;  %v1171_v23 = vpack.c.bf16 %v242_v20, %v241_v19  ;;  %v122_v24 = vld [vmem:[#allocation12 + $0x20] sm:$0xff]  ;;  %v123_v25 = vld [vmem:[#allocation12 + $0x28] sm:$0xff]  ;;  %v243_v26 = vld [vmem:[#allocation14 + $0x50] sm:$0xff] }
  0x73   :  { %1133 = vmatpush3.bf16.msra.mxu0 %v1132_v21  ;;  %v244_v27 = vld [vmem:[#allocation14 + $0x58] sm:$0xff]  ;;  %v1138_v28 = vpack.c.bf16 %v123_v25, %v122_v24  ;;  %v124_v30 = vld [vmem:[#allocation12 + $0x30] sm:$0xff]  ;;  %v245_v32 = vld [vmem:[#allocation14 + $0x60] sm:$0xff] }
  0x74   :  { %1134 = vmatprep.subr.bf16.mxu0 %v1461_v0  ;;  %v1175_v29 = vpack.c.bf16 %v244_v27, %v243_v26  ;;  %v125_v31 = vld [vmem:[#allocation12 + $0x38] sm:$0xff]  ;;  %v246_v33 = vld [vmem:[#allocation14 + $0x68] sm:$0xff]  ;;  %v126_v36 = vld [vmem:[#allocation12 + $0x40] sm:$0xff] }
  0x75   :  { %1162 = vmatpush3.bf16.msra.mxu1 %v1159_v7  ;;  %v1141_v34 = vpack.c.bf16 %v125_v31, %v124_v30  ;;  %v1179_v35 = vpack.c.bf16 %v246_v33, %v245_v32  ;;  %v127_v37 = vld [vmem:[#allocation12 + $0x48] sm:$0xff]  ;;  %v247_v38 = vld [vmem:[#allocation14 + $0x70] sm:$0xff]  ;;  %v248_v39 = vld [vmem:[#allocation14 + $0x78] sm:$0xff] }
  0x76   :  { %1164 = vmatprep.subr.bf16.mxu1 %v1163_v10  ;;  %v1144_v40 = vpack.c.bf16 %v127_v37, %v126_v36  ;;  %v1183_v41 = vpack.c.bf16 %v248_v39, %v247_v38  ;;  %v128_v42 = vld [vmem:[#allocation12 + $0x50] sm:$0xff]  ;;  %v129_v43 = vld [vmem:[#allocation12 + $0x58] sm:$0xff]  ;;  %v130_v45 = vld [vmem:[#allocation12 + $0x60] sm:$0xff] }
  0x77   :  { %1136 = vmatpush3.bf16.msra.mxu0 %v1135_v22  ;;  %v1147_v44 = vpack.c.bf16 %v129_v43, %v128_v42  ;;  %v131_v46 = vld [vmem:[#allocation12 + $0x68] sm:$0xff]  ;;  %v219_v49 = vld [vmem:[#allocation9 + $0x10] sm:$0xff]  ;;  %v133_v51 = vld [vmem:[#allocation12 + $0x78] sm:$0xff] }
  0x78   :  { %1137 = vmatprep.subr.bf16.mxu0 %v1461_v0  ;;  %v218_v47 = vld [vmem:[#allocation9 + $0x8] sm:$0xff]  ;;  %v1150_v48 = vpack.c.bf16 %v131_v46, %v130_v45  ;;  %v132_v50 = vld [vmem:[#allocation12 + $0x70] sm:$0xff]  ;;  %v220_v52 = vld [vmem:[#allocation9 + $0x18] sm:$0xff] }
  0x79   :  { %1166 = vmatpush3.bf16.msra.mxu1 %v1163_v10  ;;  %v1153_v53 = vpack.c.bf16 %v133_v51, %v132_v50  ;;  %v221_v54 = vld [vmem:[#allocation9 + $0x20] sm:$0xff]  ;;  %v222_v55 = vld [vmem:[#allocation9 + $0x28] sm:$0xff]  ;;  %v117_v56 = vld [vmem:[#allocation6] sm:$0xff] }
  0x7a   :  { %1168 = vmatprep.subr.bf16.mxu1 %v1167_v15  ;;  %v223_v57 = vld [vmem:[#allocation9 + $0x30] sm:$0xff]  ;;  %v224_v58 = vld [vmem:[#allocation9 + $0x38] sm:$0xff]  ;;  %v225_v59 = vld [vmem:[#allocation9 + $0x40] sm:$0xff] }
  0x7b   :  { %1139 = vmatpush3.bf16.msra.mxu0 %v1138_v28  ;;  %v226_v60 = vld [vmem:[#allocation9 + $0x48] sm:$0xff]  ;;  %v227_v61 = vld [vmem:[#allocation9 + $0x50] sm:$0xff]  ;;  %v228_v62 = vld [vmem:[#allocation9 + $0x58] sm:$0xff] }
  0x7c   :  { %1140 = vmatprep.subr.bf16.mxu0 %v1461_v0  ;;  %v229_v63 = vld [vmem:[#allocation9 + $0x60] sm:$0xff]  ;;  %v230_v2 = vld [vmem:[#allocation9 + $0x68] sm:$0xff]  ;;  %v231_v3 = vld [vmem:[#allocation9 + $0x70] sm:$0xff] }
  0x7d   :  { %1170 = vmatpush3.bf16.msra.mxu1 %v1167_v15  ;;  %v232_v4 = vld [vmem:[#allocation9 + $0x78] sm:$0xff]  ;;  %v797_v5 = vld [vmem:[%s1670_s6] ss:$0 sm:$0xff]  ;;  %v417_v51 = vld [vmem:[#allocation15] sm:$0xff] }
  0x7e   :  { %1172 = vmatprep.subr.bf16.mxu1 %v1171_v23 }
  0x7f   :  { %1142 = vmatpush3.bf16.msra.mxu0 %v1141_v34 }
  0x80   :  { %1143 = vmatprep.subr.bf16.mxu0 %v1461_v0 }
  0x81   :  { %1174 = vmatpush3.bf16.msra.mxu1 %v1171_v23 }
  0x82   :  { %1176 = vmatprep.subr.bf16.mxu1 %v1175_v29 }
  0x83   :  { %1145 = vmatpush3.bf16.msra.mxu0 %v1144_v40 }
  0x84   :  { %1146 = vmatprep.subr.bf16.mxu0 %v1461_v0 }
  0x85   :  { %1178 = vmatpush3.bf16.msra.mxu1 %v1175_v29 }
  0x86   :  { %1180 = vmatprep.subr.bf16.mxu1 %v1179_v35 }
  0x87   :  { %1148 = vmatpush3.bf16.msra.mxu0 %v1147_v44 }
  0x88   :  { %1149 = vmatprep.subr.bf16.mxu0 %v1461_v0 }
  0x89   :  { %1182 = vmatpush3.bf16.msra.mxu1 %v1179_v35 }
  0x8a   :  { %1184 = vmatprep.subr.bf16.mxu1 %v1183_v41 }
  0x8b   :  { %1151 = vmatpush3.bf16.msra.mxu0 %v1150_v48  ;;  %v796_v48 = vld [vmem:[%s1668_s4] ss:$0 sm:$0xff] }
  0x8c   :  { %1152 = vmatprep.subr.bf16.mxu0 %v1461_v0 }
  0x8d   :  { %1186 = vmatpush3.bf16.msra.mxu1 %v1183_v41 }
  0x8e   :  { %1219 = vmatprep.subr.bf16.mxu1 %v1461_v0 }
  0x8f   :  { %1154 = vmatpush3.bf16.msra.mxu0 %v1153_v53  ;;  %v419_v53 = vld [vmem:[#allocation15 + $0x10] sm:$0xff] }
  0x90   :  { %982 = vmatmul.mubr.f32.vlgmr.msra.gmra.mrb[0].mxu1 %v218_v47 }
  0x91   :  { %984 = vmatprep.mubr.f32.mxu1 %v219_v49 }
  0x92   :  { %947 = vmatmul.mubr.f32.vlgmr.msra.gmra.mrb[0].mxu0 %v117_v56  ;;  %v1464_v56 = vmov -inf  }
  0x93   :  { %214 = vst.msk [vmem:[#allocation3] sm:$0xff] %vm213_vm0, %v1464_v56 }
  0x94   :  { %985 = vmatmul.mubr.f32.gmra.mrb[2].mxu1 %v220_v52  ;;  %v418_v52 = vld [vmem:[#allocation15 + $0x8] sm:$0xff] }
  0x95   :  { %987 = vmatprep.mubr.f32.mxu1 %v221_v54  ;;  %v1187_v54 = vpack.c.bf16 %v418_v52, %v417_v51 }
  0x97   :  { %1188 = vmatprep.subr.bf16.mxu0 %v1187_v54 }
  0x98   :  { %988 = vmatmul.mubr.f32.gmra.mrb[4].mxu1 %v222_v55  ;;  %v420_v55 = vld [vmem:[#allocation15 + $0x18] sm:$0xff]  ;;  %1190 = vmatpush3.bf16.msra.mxu0 %v1187_v54 }
  0x99   :  { %990 = vmatprep.mubr.f32.mxu1 %v223_v57  ;;  %v1191_v57 = vpack.c.bf16 %v420_v55, %v419_v53 }
  0x9b   :  { %1192 = vmatprep.subr.bf16.mxu0 %v1191_v57 }
  0x9c   :  { %991 = vmatmul.mubr.f32.gmra.mrb[6].mxu1 %v224_v58  ;;  %v421_v58 = vld [vmem:[#allocation15 + $0x20] sm:$0xff]  ;;  %1194 = vmatpush3.bf16.msra.mxu0 %v1191_v57 }
  0x9d   :  { %993 = vmatprep.mubr.f32.mxu1 %v225_v59  ;;  %v422_v59 = vld [vmem:[#allocation15 + $0x28] sm:$0xff] }
  0xa0   :  { %994 = vmatmul.mubr.f32.gmra.mrb[8].mxu1 %v226_v60  ;;  %v1195_v60 = vpack.c.bf16 %v422_v59, %v421_v58 }
  0xa1   :  { %996 = vmatprep.mubr.f32.mxu1 %v227_v61  ;;  %v401_v61 = vld [vmem:[#allocation11] sm:$0xff] }
  0xa2   :  { %1037 = vmatprep.mubr.f32.mxu0 %v401_v61  ;;  %1196 = vmatprep.subr.bf16.mxu0 %v1195_v60 }
  0xa3   :  { %1198 = vmatpush3.bf16.msra.mxu0 %v1195_v60 }
  0xa4   :  { %997 = vmatmul.mubr.f32.gmra.mrb[10].mxu1 %v228_v62  ;;  %v423_v62 = vld [vmem:[#allocation15 + $0x30] sm:$0xff] }
  0xa5   :  { %999 = vmatprep.mubr.f32.mxu1 %v229_v63  ;;  %v424_v63 = vld [vmem:[#allocation15 + $0x38] sm:$0xff] }
  0xa8   :  { %1000 = vmatmul.mubr.f32.gmra.mrb[12].mxu1 %v230_v2  ;;  %v1199_v2 = vpack.c.bf16 %v424_v63, %v423_v62  ;;  %v663_v62 = vld [vmem:[#allocation3] sm:$0xff] }
  0xa9   :  { %1002 = vmatprep.mubr.f32.mxu1 %v231_v3  ;;  %v425_v3 = vld [vmem:[#allocation15 + $0x40] sm:$0xff] }
  0xaa   :  { %1200 = vmatprep.subr.bf16.mxu0 %v1199_v2 }
  0xab   :  { %1202 = vmatpush3.bf16.msra.mxu0 %v1199_v2 }
  0xac   :  { %1003 = vmatmul.mubr.f32.gmra.mrb[14].mxu1 %v232_v4  ;;  %v426_v4 = vld [vmem:[#allocation15 + $0x48] sm:$0xff] }
  0xad   :  { %1093 = vmatprep.mubr.msk.f32.mxu1 %vm1462_vm1, %v1463_v1 }
 0x163   :  { %v983_v6 = vpop.f32.mrb[0].mxu1 }
 0x164   :  { %v328_v7 = vadd.f32 %v983_v6, %v797_v5  ;;  %v322_v8 = vpop.f32.mrb[1].mxu1  ;;  %v427_v6 = vld [vmem:[#allocation15 + $0x50] sm:$0xff] }
 0x165   :  { %v323_v9 = vadd.f32 %v797_v5, %v322_v8  ;;  %v207_v17 = vpop.f32.mrb[0].mxu0 }
 0x166   :  { %v948_v20 = vpop.f32.mrb[1].mxu0  ;;  %v208_v49 = vadd.f32 %v796_v48, %v207_v17  ;;  %v404_v17 = vld [vmem:[#allocation11 + $0x18] sm:$0xff] }
 0x167   :  { %v1220_v10 = vpack.c.bf16 %v328_v7, %v323_v9  ;;  %v986_v11 = vpop.f32.mrb[2].mxu1  ;;  %v428_v7 = vld [vmem:[#allocation15 + $0x58] sm:$0xff]  ;;  %v429_v9 = vld [vmem:[#allocation15 + $0x60] sm:$0xff]  ;;  %v407_v20 = vld [vmem:[#allocation11 + $0x30] sm:$0xff] }
 0x168   :  { %v338_v12 = vadd.f32 %v986_v11, %v797_v5  ;;  %v332_v13 = vpop.f32.mrb[3].mxu1  ;;  %v211_v50 = vmul.f32 0.5, %v208_v49  ;;  %v1207_v8 = vpack.c.bf16 %v428_v7, %v427_v6 }
 0x169   :  { %1221 = vmatpush3.bf16.xpose.msra.mxu1 %v1220_v10  ;;  %v333_v14 = vadd.f32 %v797_v5, %v332_v13  ;;  %v430_v10 = vld [vmem:[#allocation15 + $0x68] sm:$0xff]  ;;  %v432_v13 = vld [vmem:[#allocation15 + $0x78] sm:$0xff] }
 0x16a   :  { %1222 = vmatprep.subr.bf16.mxu1 %v1461_v0  ;;  %v1211_v11 = vpack.c.bf16 %v430_v10, %v429_v9 }
 0x16b   :  { %v1223_v15 = vpack.c.bf16 %v338_v12, %v333_v14  ;;  %v989_v16 = vpop.f32.mrb[4].mxu1  ;;  %v431_v12 = vld [vmem:[#allocation15 + $0x70] sm:$0xff] }
 0x16c   :  { %v348_v18 = vadd.f32 %v989_v16, %v797_v5  ;;  %v342_v19 = vpop.f32.mrb[5].mxu1  ;;  %v1215_v14 = vpack.c.bf16 %v432_v13, %v431_v12  ;;  %v403_v16 = vld [vmem:[#allocation11 + $0x10] sm:$0xff] }
 0x16d   :  { %v343_v21 = vadd.f32 %v797_v5, %v342_v19  ;;  %v406_v19 = vld [vmem:[#allocation11 + $0x28] sm:$0xff] }
 0x16f   :  { %v1226_v22 = vpack.c.bf16 %v348_v18, %v343_v21  ;;  %v992_v23 = vpop.f32.mrb[6].mxu1  ;;  %v405_v18 = vld [vmem:[#allocation11 + $0x20] sm:$0xff]  ;;  %v408_v21 = vld [vmem:[#allocation11 + $0x38] sm:$0xff] }
 0x170   :  { %v358_v24 = vadd.f32 %v992_v23, %v797_v5  ;;  %v352_v25 = vpop.f32.mrb[7].mxu1  ;;  %v410_v23 = vld [vmem:[#allocation11 + $0x48] sm:$0xff] }
 0x171   :  { %1224 = vmatpush3.bf16.xpose.msra.mxu1 %v1223_v15  ;;  %v353_v26 = vadd.f32 %v797_v5, %v352_v25  ;;  %v402_v15 = vld [vmem:[#allocation11 + $0x8] sm:$0xff]  ;;  %v412_v25 = vld [vmem:[#allocation11 + $0x58] sm:$0xff] }
 0x172   :  { %1225 = vmatprep.subr.bf16.mxu1 %v1461_v0 }
 0x173   :  { %v1229_v27 = vpack.c.bf16 %v358_v24, %v353_v26  ;;  %v995_v28 = vpop.f32.mrb[8].mxu1  ;;  %v411_v24 = vld [vmem:[#allocation11 + $0x50] sm:$0xff]  ;;  %v413_v26 = vld [vmem:[#allocation11 + $0x60] sm:$0xff] }
 0x174   :  { %v368_v29 = vadd.f32 %v995_v28, %v797_v5  ;;  %v362_v30 = vpop.f32.mrb[9].mxu1  ;;  %v415_v28 = vld [vmem:[#allocation11 + $0x70] sm:$0xff] }
 0x175   :  { %v363_v31 = vadd.f32 %v797_v5, %v362_v30  ;;  %v657_v30 = vlaneseq }
 0x177   :  { %v1232_v32 = vpack.c.bf16 %v368_v29, %v363_v31  ;;  %v998_v33 = vpop.f32.mrb[10].mxu1  ;;  %v416_v29 = vld [vmem:[#allocation11 + $0x78] sm:$0xff]  ;;  %v658_v31 = vand.u32 127, %v657_v30 }
 0x178   :  { %v378_v34 = vadd.f32 %v998_v33, %v797_v5  ;;  %v372_v35 = vpop.f32.mrb[11].mxu1 }
 0x179   :  { %1227 = vmatpush3.bf16.xpose.msra.mxu1 %v1226_v22  ;;  %v373_v36 = vadd.f32 %v797_v5, %v372_v35  ;;  %v409_v22 = vld [vmem:[#allocation11 + $0x40] sm:$0xff]  ;;  %vm661_vm2 = vcmp.lt.s32.totalorder %v658_v31, 8  ;;  %v1465_v35 = vmov 0  }
 0x17a   :  { %1228 = vmatprep.subr.bf16.mxu1 %v1461_v0  ;;  %1281 = vset.pattern.permute.xlu0 %v1465_v35 }
 0x17b   :  { %v1235_v37 = vpack.c.bf16 %v378_v34, %v373_v36  ;;  %v1001_v38 = vpop.f32.mrb[12].mxu1  ;;  %1282 = vset.pattern.permute.xlu1 %v1465_v35  ;;  %v798_v36 = vld [vmem:[%s1672_s8] ss:$0 sm:$0xff]  ;;  %s1466_s8 = smov [#allocation17]  }
 0x17c   :  { %v388_v39 = vadd.f32 %v1001_v38, %v797_v5  ;;  %v382_v40 = vpop.f32.mrb[13].mxu1  ;;  %s784_s16 = sshll.u32 %s1466_s8, 4  ;;  %s785_s16 = int_to_ptr.vmem [resolvable:$true] %s784_s16 }
 0x17d   :  { %v383_v41 = vadd.f32 %v797_v5, %v382_v40  ;;  %s1421_s17 = scalar_lea.vmem %s785_s16, 128  ;;  %p1426_p7 = scmp.lt.s32.totalorder %s785_s16, %s785_s16 }
 0x17e   :  { %p1422_p6 = scmp.ne.s32.totalorder %s785_s16, %s1421_s17  ;;  %p1427_p8 = scmp.lt.s32.totalorder %s1421_s17, %s1421_s17 }
 0x17f   :  { %v1238_v42 = vpack.c.bf16 %v388_v39, %v383_v41  ;;  %v1004_v43 = vpop.f32.mrb[14].mxu1 }
 0x180   :  { %v398_v44 = vadd.f32 %v1004_v43, %v797_v5  ;;  %v392_v45 = vpop.f32.mrb[15].mxu1  ;;  %p1428_p9 = por %p1427_p8, %p1426_p7 }
 0x181   :  { %1230 = vmatpush3.bf16.xpose.msra.mxu1 %v1229_v27  ;;  %v393_v46 = vadd.f32 %v797_v5, %v392_v45  ;;  %v1203_v5 = vpack.c.bf16 %v426_v4, %v425_v3  ;;  %v414_v27 = vld [vmem:[#allocation11 + $0x68] sm:$0xff] }
 0x182   :  { %1231 = vmatprep.subr.bf16.mxu1 %v1461_v0  ;;  %p1429_p10 = pnand %p1428_p9, %p1422_p6 }
 0x183   :  { %v1241_v47 = vpack.c.bf16 %v398_v44, %v393_v46  ;;  %1204 = vmatprep.subr.bf16.mxu0 %v1203_v5 }
 0x184   :  { %1206 = vmatpush3.bf16.msra.mxu0 %v1203_v5 }
 0x185   :  { %1208 = vmatprep.subr.bf16.mxu0 %v1207_v8 }
 0x188   :  { %1210 = vmatpush3.bf16.msra.mxu0 %v1207_v8 }
 0x189   :  { %1233 = vmatpush3.bf16.xpose.msra.mxu1 %v1232_v32  ;;  %1212 = vmatprep.subr.bf16.mxu0 %v1211_v11 }
 0x18a   :  { %1234 = vmatprep.subr.bf16.mxu1 %v1461_v0 }
 0x18c   :  { %1214 = vmatpush3.bf16.msra.mxu0 %v1211_v11 }
 0x18d   :  { %1216 = vmatprep.subr.bf16.mxu0 %v1215_v14 }
 0x190   :  { %1218 = vmatpush3.bf16.msra.mxu0 %v1215_v14 }
 0x191   :  { %1236 = vmatpush3.bf16.xpose.msra.mxu1 %v1235_v37  ;;  %1243 = vmatprep.subr.bf16.mxu0 %v1461_v0 }
 0x192   :  { %1237 = vmatprep.subr.bf16.mxu1 %v1461_v0 }
 0x193   :  { %1038 = vmatmul.mubr.f32.vlgmr.msra.gmra.mrb[2].mxu0 %v402_v15 }
 0x194   :  { %1040 = vmatprep.mubr.f32.mxu0 %v403_v16 }
 0x197   :  { %1041 = vmatmul.mubr.f32.gmra.mrb[4].mxu0 %v404_v17 }
 0x198   :  { %1043 = vmatprep.mubr.f32.mxu0 %v405_v18 }
 0x199   :  { %1239 = vmatpush3.bf16.xpose.msra.mxu1 %v1238_v42 }
 0x19a   :  { %1240 = vmatprep.subr.bf16.mxu1 %v1461_v0 }
 0x19b   :  { %1044 = vmatmul.mubr.f32.gmra.mrb[6].mxu0 %v406_v19 }
 0x19c   :  { %1046 = vmatprep.mubr.f32.mxu0 %v407_v20 }
 0x19f   :  { %1047 = vmatmul.mubr.f32.gmra.mrb[8].mxu0 %v408_v21 }
 0x1a0   :  { %1049 = vmatprep.mubr.f32.mxu0 %v409_v22 }
 0x1a1   :  { %1242 = vmatpush3.bf16.xpose.msra.mxu1 %v1241_v47 }
 0x1a3   :  { %1050 = vmatmul.mubr.f32.gmra.mrb[10].mxu0 %v410_v23 }
 0x1a4   :  { %1052 = vmatprep.mubr.f32.mxu0 %v411_v24  ;;  %v678_v24 = vld [vmem:[#allocation4] sm:$0xff] }
 0x1a7   :  { %1053 = vmatmul.mubr.f32.gmra.mrb[12].mxu0 %v412_v25 }
 0x1a8   :  { %1094 = vmatmul.mubr.f32.vlgmr.msra.gmra.mrb[16].mxu1 %v211_v50  ;;  %1055 = vmatprep.mubr.f32.mxu0 %v413_v26 }
 0x1ab   :  { %1056 = vmatmul.mubr.f32.gmra.mrb[14].mxu0 %v414_v27 }
 0x1ac   :  { %1058 = vmatprep.mubr.f32.mxu0 %v415_v28 }
 0x1af   :  { %1059 = vmatmul.mubr.f32.gmra.mrb[16].mxu0 %v416_v29 }
 0x1b0   :  { %1128 = vmatprep.mubr.msk.f32.mxu0 %vm1462_vm1, %v1463_v1 }
 0x266   :  { %v1039_v37 = vpop.f32.mrb[2].mxu0 }
 0x267   :  { %v512_v38 = vadd.f32 %v1039_v37, %v798_v36  ;;  %v506_v39 = vpop.f32.mrb[3].mxu0 }
 0x268   :  { %v507_v1 = vadd.f32 %v798_v36, %v506_v39 }
 0x26a   :  { %v1244_v40 = vpack.c.bf16 %v512_v38, %v507_v1  ;;  %v1042_v41 = vpop.f32.mrb[4].mxu0 }
 0x26b   :  { %v522_v42 = vadd.f32 %v1042_v41, %v798_v36  ;;  %v516_v43 = vpop.f32.mrb[5].mxu0 }
 0x26c   :  { %v517_v44 = vadd.f32 %v798_v36, %v516_v43  ;;  %1245 = vmatpush3.bf16.msra.mxu0 %v1244_v40 }
 0x26d   :  { %1246 = vmatprep.subr.bf16.mxu0 %v1461_v0 }
 0x26e   :  { %v1247_v45 = vpack.c.bf16 %v522_v42, %v517_v44  ;;  %v1045_v46 = vpop.f32.mrb[6].mxu0 }
 0x26f   :  { %v532_v47 = vadd.f32 %v1045_v46, %v798_v36  ;;  %v526_v48 = vpop.f32.mrb[7].mxu0 }
 0x270   :  { %v527_v49 = vadd.f32 %v798_v36, %v526_v48  ;;  %1248 = vmatpush3.bf16.msra.mxu0 %v1247_v45 }
 0x271   :  { %1249 = vmatprep.subr.bf16.mxu0 %v1461_v0 }
 0x272   :  { %v1250_v50 = vpack.c.bf16 %v532_v47, %v527_v49  ;;  %v1048_v51 = vpop.f32.mrb[8].mxu0 }
 0x273   :  { %v542_v52 = vadd.f32 %v1048_v51, %v798_v36  ;;  %v536_v53 = vpop.f32.mrb[9].mxu0 }
 0x274   :  { %v537_v54 = vadd.f32 %v798_v36, %v536_v53  ;;  %1251 = vmatpush3.bf16.msra.mxu0 %v1250_v50 }
 0x275   :  { %1252 = vmatprep.subr.bf16.mxu0 %v1461_v0 }
 0x276   :  { %v1253_v55 = vpack.c.bf16 %v542_v52, %v537_v54  ;;  %v1051_v56 = vpop.f32.mrb[10].mxu0 }
 0x277   :  { %v552_v57 = vadd.f32 %v1051_v56, %v798_v36  ;;  %v546_v58 = vpop.f32.mrb[11].mxu0 }
 0x278   :  { %v547_v59 = vadd.f32 %v798_v36, %v546_v58  ;;  %1254 = vmatpush3.bf16.msra.mxu0 %v1253_v55 }
 0x279   :  { %1255 = vmatprep.subr.bf16.mxu0 %v1461_v0 }
 0x27a   :  { %v1256_v60 = vpack.c.bf16 %v552_v57, %v547_v59  ;;  %v1054_v61 = vpop.f32.mrb[12].mxu0 }
 0x27b   :  { %v652_v32 = vpop.f32.mrb[16].mxu1  ;;  %v562_v3 = vadd.f32 %v1054_v61, %v798_v36  ;;  %v556_v4 = vpop.f32.mrb[13].mxu0 }
 0x27c   :  { %v1095_v33 = vpop.f32.mrb[17].mxu1  ;;  %v1636_v34 = vsel %vm661_vm2, %v652_v32, -1e+30  ;;  %1257 = vmatpush3.bf16.msra.mxu0 %v1256_v60  ;;  %v557_v6 = vadd.f32 %v798_v36, %v556_v4 }
 0x27d   :  { %664 = vmax.xlane.f32.xlu0 %v1636_v34  ;;  %1258 = vmatprep.subr.bf16.mxu0 %v1461_v0 }
 0x27e   :  { %v1259_v7 = vpack.c.bf16 %v562_v3, %v557_v6  ;;  %v1057_v8 = vpop.f32.mrb[14].mxu0 }
 0x27f   :  { %v566_v9 = vpop.f32.mrb[15].mxu0  ;;  %v572_v10 = vadd.f32 %v1057_v8, %v798_v36 }
 0x280   :  { %v567_v11 = vadd.f32 %v798_v36, %v566_v9  ;;  %1260 = vmatpush3.bf16.msra.mxu0 %v1259_v7 }
 0x281   :  { %1261 = vmatprep.subr.bf16.mxu0 %v1461_v0 }
 0x282   :  { %v1060_v12 = vpop.f32.mrb[16].mxu0  ;;  %v1262_v15 = vpack.c.bf16 %v572_v10, %v567_v11 }
 0x283   :  { %v582_v13 = vadd.f32 %v1060_v12, %v798_v36  ;;  %v576_v14 = vpop.f32.mrb[17].mxu0 }
 0x284   :  { %v577_v16 = vadd.f32 %v798_v36, %v576_v14  ;;  %1263 = vmatpush3.bf16.msra.mxu0 %v1262_v15 }
 0x285   :  { %1264 = vmatprep.subr.bf16.mxu0 %v1461_v0 }
 0x286   :  { %v1265_v17 = vpack.c.bf16 %v582_v13, %v577_v16 }
 0x288   :  { %1266 = vmatpush3.bf16.msra.mxu0 %v1265_v17 }
 0x30a   :  { %v665_v63 = vpop.xlane.xlu0 %664 }
 0x30b   :  { %v666_v2 = vmax.f32 %v663_v62, %v665_v63 }
 0x30d   :  { %v667_v5 = vsub.f32 %v663_v62, %v666_v2  ;;  %764 = vst.msk [vmem:[#allocation3] sm:$0xff] %vm213_vm0, %v666_v2  ;;  %672 = vperm.xlu0 %1281, %v666_v2  }
 0x30f   :  { %v668_v22 = vmul.f32 1.442695, %v667_v5 }
 0x38c   :  { %v673_v18 = vpop.permute.xlu0 %672 }
 0x38d   :  { %v675_v19 = vsub.f32 %v1636_v34, %v673_v18 }
 0x38f   :  { %v676_v20 = vmul.f32 1.442695, %v675_v19 }
 0x391   :  { %1283 = vpow2.f32 %v676_v20 }
 0x392   :  { %1285 = vpow2.f32 %v668_v22 }
 0x39b   :  { %v1284_v21 = vpop.eup %1283 }
 0x39c   :  { %680 = vadd.xlane.f32.xlu1 %v1284_v21  ;;  %1129 = vmatmul.mubr.f32.vlgmr.msra.gmra.mrb[18].mxu0 %v1284_v21  ;;  %v1286_v23 = vpop.eup %1285 }
 0x39d   :  { %v679_v25 = vmul.f32 %v1286_v23, %v678_v24 }
 0x3ad   :  { %688 = vperm.xlu1 %1282, %v1286_v23  }
 0x429   :  { %v681_v26 = vpop.xlane.xlu1 %680 }
 0x42a   :  { %v682_v27 = vadd.f32 %v681_v26, %v679_v25 }
 0x42c   :  { %684 = vst.msk [vmem:[#allocation4] sm:$0xff] %vm213_vm0, %v682_v27 }
 0x42d   :  { %v689_v31 = vpop.permute.xlu1 %688 }
 0x42e   :  { %v691_v32 = vmul.f32 0.0, %v689_v31 }
 0x433   :  { %v768_v0 = vld [vmem:[#allocation4] sm:$0xff] }
 0x434   :  { %1287 = vrcp.f32 %v768_v0 }
 0x43e   :  { %v1288_v28 = vpop.eup %1287 }
 0x43f   :  { %773 = vperm.xlu1 %1282, %v1288_v28  }
 0x46f   :  { %v758_v29 = vpop.f32.mrb[18].mxu0 }
 0x470   :  { %v1130_v30 = vpop.f32.mrb[19].mxu0  ;;  %v762_v33 = vadd.f32 %v758_v29, %v691_v32 }
 0x4be   :  { %v774_v34 = vpop.permute.xlu1 %773 }
 0x4bf   :  { %v776_v35 = vmul.f32 %v774_v34, %v762_v33 }
 0x4c1   :  { %777 = vst [vmem:[#allocation17] sm:$0xff] %v776_v35 }
 0x4c2   :  { %1432 = shalt.err (!%p1429_p10)
}
 0x4c3   :  { %s1433_s22 = scalar_lea.hbm %s1673_s9, 128 }
 0x4c4   :  { %p1434_p11 = scmp.ne.s32.totalorder %s1673_s9, %s1433_s22  ;;  %p1437_p12 = scmp.lt.u32.totalorder %s1433_s22, %s1673_s9 }
 0x4c6   :  { %p1439_p13 = pnand %p1437_p12, %p1434_p11 }
 0x4c8   :  { %1442 = shalt.err (!%p1439_p13)
}
 0x4c9   :  { %787 = dma.vmem_to_hbm [thread:$0]  %s785_s16, 128, %s1673_s9, [#allocation8]  }
 0x4ca   :  { %1451 = dma.done.wait [#allocation8], 128  }
 0x4cb   :  { %1452 = vsyncadd [#allocation8], 4294967168 }
 0x4cc   :  { %791 = vsyncpa [#allocation7], 1 }
 0x4cd   :  { %792 = vsyncpa [#allocation10], 1 }
 0x4ce   :  { %793 = vsyncpa [#allocation13], 1 }
 0x4cf   :  { %794 = vsyncpa [#allocation16], 1 }
 0x4d0   :  { %795 = vsyncpa [#allocation8], 1 }

</bundles_post_ra>
